<compile_context>
chip_gen: v7x
topology: tpu7x:2x2x1
jax: 0.10.0
libtpu: 0.0.40
codegen_flags: <defaults>
</compile_context>

<pallas_src>
import jax
import jax.numpy as jnp
from jax.experimental import pallas as pl
from jax.experimental.pallas import tpu as pltpu

K = 3  # MaxPool2d kernel size
S = 3  # PyTorch default stride = kernel_size

# Per-step input-block budget (bytes).  With double buffering of input+output
# this stays well under the requested scoped-VMEM limit and under v7x's
# 64 MiB physical VMEM, while being large enough to hit ~85%+ of HBM BW.
_INPUT_BLOCK_BUDGET_BYTES = 8 * 1024 * 1024
_VMEM_LIMIT_BYTES = 48 * 1024 * 1024


def _maxpool2d_kernel(x_ref, o_ref):
    # x_ref: (Th*S, W, Cb)  channels-last; C on lanes (dense)
    # o_ref: (Th,   Wo, Cb)
    th, wo, _ = o_ref.shape
    # Init from window element (0, 0): no -inf fill, native-dtype max (exact).
    acc = x_ref[pl.ds(0, th, S), pl.ds(0, wo, S), :]
    for di in range(K):
        for dj in range(K):
            if di == 0 and dj == 0:
                continue
            # Strides hit only the leading (H) and sublane (W) axes; the lane
            # axis (channels) is always read densely.
            acc = jnp.maximum(acc, x_ref[pl.ds(di, th, S), pl.ds(dj, wo, S), :])
    o_ref[...] = acc


def maxpool2d(x):
    """MaxPool2d(kernel_size=3, stride=3, padding=0, ceil_mode=False) on NCHW."""
    N, C, H, W = x.shape
    Ho = (H - K) // S + 1  # ceil_mode=False -> floor
    Wo = (W - K) // S + 1

    # Channels-last so C is the (dense) lane dimension inside the kernel.
    xt = jnp.transpose(x, (0, 2, 3, 1))  # (N, H, W, C)

    # --- channel block: full C unless C is a large multiple of 128 ---------
    if C % 128 == 0:
        cb = 128
        while cb * 2 <= min(C, 512) and C % (cb * 2) == 0:
            cb *= 2
    else:
        cb = C  # full dim -> satisfies the (8,128) rule for any C
    nc = C // cb

    # --- output-row tile: largest divisor of Ho whose input slab fits budget
    row_bytes = S * W * cb * x.dtype.itemsize  # input bytes per output row
    th = max(1, min(Ho, _INPUT_BLOCK_BUDGET_BYTES // max(row_bytes, 1)))
    while Ho % th != 0:  # exact tiling: no OOB blocks, no halo (K == S)
        th -= 1
    nh = Ho // th

    grid = (N, nh, nc)
    out_t = pl.pallas_call(
        _maxpool2d_kernel,
        out_shape=jax.ShapeDtypeStruct((N, Ho, Wo, C), x.dtype),
        grid=grid,
        in_specs=[
            pl.BlockSpec((None, th * S, W, cb), lambda n, h, c: (n, h, 0, c)),
        ],
        out_specs=pl.BlockSpec((None, th, Wo, cb), lambda n, h, c: (n, h, 0, c)),
        compiler_params=pltpu.CompilerParams(
            dimension_semantics=("parallel", "parallel", "parallel"),
            vmem_limit_bytes=_VMEM_LIMIT_BYTES,
        ),
    )(xt)

    # Back to PyTorch's NCHW layout.
    return jnp.transpose(out_t, (0, 3, 1, 2))


class Tudui:
    """JAX/Pallas equivalent of the PyTorch Tudui module (MaxPool2d(3))."""

    def __init__(self):
        self._forward = jax.jit(maxpool2d)

    def __call__(self, x):
        return self._forward(x)


if __name__ == "__main__":
    key = jax.random.PRNGKey(0)
    N, C, H, W = 2, 4, 16, 16
    x = jax.random.normal(key, (N, C, H, W), dtype=jnp.float32)

    model = Tudui()
    out = jax.block_until_ready(model(x))

    Ho = (H - K) // S + 1
    Wo = (W - K) // S + 1
    assert out.shape == (N, C, Ho, Wo), out.shape

    # Plain-JAX reference for the same pooling semantics.
    ref = x[:, :, : Ho * S, : Wo * S].reshape(N, C, Ho, S, Wo, S).max(axis=(3, 5))
    assert jnp.allclose(out, ref), "mismatch vs reference max-pool"

    print("KERNEL_OK")
</pallas_src>

<mosaic_0001>
module attributes {stable_mosaic.version = 11 : i64} {
  func.func @_maxpool2d_kernel(%arg0: i32, %arg1: i32, %arg2: i32, %arg3: memref<1x15x16x4xf32, #tpu.memory_space<vmem>>, %arg4: memref<1x5x5x4xf32, #tpu.memory_space<vmem>>) attributes {dimension_semantics = [#tpu.dimension_semantics<parallel>, #tpu.dimension_semantics<parallel>, #tpu.dimension_semantics<parallel>], iteration_bounds = array<i64: 2, 1, 1>, scalar_prefetch = 0 : i64, scratch_operands = 0 : i64, tpu.core_type = #tpu.core_type<tc>, window_params = [{transform_indices = @transform_0, window_bounds = array<i64: 1, 15, 16, 4>}, {transform_indices = @transform_1, window_bounds = array<i64: 1, 5, 5, 4>}]} {
    %c0 = arith.constant 0 : index
    %c0_0 = arith.constant 0 : index
    %c0_1 = arith.constant 0 : index
    %c0_2 = arith.constant 0 : index
    %0 = tpu.strided_load %arg3[%c0, %c0_0, %c0_1, %c0_2] {strides = array<i32: 1, 3, 3, 1>} : memref<1x15x16x4xf32, #tpu.memory_space<vmem>>, vector<1x5x5x4xf32>
    %1 = vector.shape_cast %0 : vector<1x5x5x4xf32> to vector<5x5x4xf32>
    %c0_3 = arith.constant 0 : index
    %c0_4 = arith.constant 0 : index
    %c1 = arith.constant 1 : index
    %c0_5 = arith.constant 0 : index
    %2 = tpu.strided_load %arg3[%c0_3, %c0_4, %c1, %c0_5] {strides = array<i32: 1, 3, 3, 1>} : memref<1x15x16x4xf32, #tpu.memory_space<vmem>>, vector<1x5x5x4xf32>
    %3 = vector.shape_cast %2 : vector<1x5x5x4xf32> to vector<5x5x4xf32>
    %4 = arith.maximumf %1, %3 : vector<5x5x4xf32>
    %c0_6 = arith.constant 0 : index
    %c0_7 = arith.constant 0 : index
    %c2 = arith.constant 2 : index
    %c0_8 = arith.constant 0 : index
    %5 = tpu.strided_load %arg3[%c0_6, %c0_7, %c2, %c0_8] {strides = array<i32: 1, 3, 3, 1>} : memref<1x15x16x4xf32, #tpu.memory_space<vmem>>, vector<1x5x5x4xf32>
    %6 = vector.shape_cast %5 : vector<1x5x5x4xf32> to vector<5x5x4xf32>
    %7 = arith.maximumf %4, %6 : vector<5x5x4xf32>
    %c0_9 = arith.constant 0 : index
    %c1_10 = arith.constant 1 : index
    %c0_11 = arith.constant 0 : index
    %c0_12 = arith.constant 0 : index
    %8 = tpu.strided_load %arg3[%c0_9, %c1_10, %c0_11, %c0_12] {strides = array<i32: 1, 3, 3, 1>} : memref<1x15x16x4xf32, #tpu.memory_space<vmem>>, vector<1x5x5x4xf32>
    %9 = vector.shape_cast %8 : vector<1x5x5x4xf32> to vector<5x5x4xf32>
    %10 = arith.maximumf %7, %9 : vector<5x5x4xf32>
    %c0_13 = arith.constant 0 : index
    %c1_14 = arith.constant 1 : index
    %c1_15 = arith.constant 1 : index
    %c0_16 = arith.constant 0 : index
    %11 = tpu.strided_load %arg3[%c0_13, %c1_14, %c1_15, %c0_16] {strides = array<i32: 1, 3, 3, 1>} : memref<1x15x16x4xf32, #tpu.memory_space<vmem>>, vector<1x5x5x4xf32>
    %12 = vector.shape_cast %11 : vector<1x5x5x4xf32> to vector<5x5x4xf32>
    %13 = arith.maximumf %10, %12 : vector<5x5x4xf32>
    %c0_17 = arith.constant 0 : index
    %c1_18 = arith.constant 1 : index
    %c2_19 = arith.constant 2 : index
    %c0_20 = arith.constant 0 : index
    %14 = tpu.strided_load %arg3[%c0_17, %c1_18, %c2_19, %c0_20] {strides = array<i32: 1, 3, 3, 1>} : memref<1x15x16x4xf32, #tpu.memory_space<vmem>>, vector<1x5x5x4xf32>
    %15 = vector.shape_cast %14 : vector<1x5x5x4xf32> to vector<5x5x4xf32>
    %16 = arith.maximumf %13, %15 : vector<5x5x4xf32>
    %c0_21 = arith.constant 0 : index
    %c2_22 = arith.constant 2 : index
    %c0_23 = arith.constant 0 : index
    %c0_24 = arith.constant 0 : index
    %17 = tpu.strided_load %arg3[%c0_21, %c2_22, %c0_23, %c0_24] {strides = array<i32: 1, 3, 3, 1>} : memref<1x15x16x4xf32, #tpu.memory_space<vmem>>, vector<1x5x5x4xf32>
    %18 = vector.shape_cast %17 : vector<1x5x5x4xf32> to vector<5x5x4xf32>
    %19 = arith.maximumf %16, %18 : vector<5x5x4xf32>
    %c0_25 = arith.constant 0 : index
    %c2_26 = arith.constant 2 : index
    %c1_27 = arith.constant 1 : index
    %c0_28 = arith.constant 0 : index
    %20 = tpu.strided_load %arg3[%c0_25, %c2_26, %c1_27, %c0_28] {strides = array<i32: 1, 3, 3, 1>} : memref<1x15x16x4xf32, #tpu.memory_space<vmem>>, vector<1x5x5x4xf32>
    %21 = vector.shape_cast %20 : vector<1x5x5x4xf32> to vector<5x5x4xf32>
    %22 = arith.maximumf %19, %21 : vector<5x5x4xf32>
    %c0_29 = arith.constant 0 : index
    %c2_30 = arith.constant 2 : index
    %c2_31 = arith.constant 2 : index
    %c0_32 = arith.constant 0 : index
    %23 = tpu.strided_load %arg3[%c0_29, %c2_30, %c2_31, %c0_32] {strides = array<i32: 1, 3, 3, 1>} : memref<1x15x16x4xf32, #tpu.memory_space<vmem>>, vector<1x5x5x4xf32>
    %24 = vector.shape_cast %23 : vector<1x5x5x4xf32> to vector<5x5x4xf32>
    %25 = arith.maximumf %22, %24 : vector<5x5x4xf32>
    %c0_33 = arith.constant 0 : index
    %c0_34 = arith.constant 0 : index
    %c0_35 = arith.constant 0 : index
    %c0_36 = arith.constant 0 : index
    %26 = vector.load %arg4[%c0_33, %c0_34, %c0_35, %c0_36] : memref<1x5x5x4xf32, #tpu.memory_space<vmem>>, vector<1x5x5x4xf32>
    %27 = vector.shape_cast %26 : vector<1x5x5x4xf32> to vector<5x5x4xf32>
    %28 = vector.shape_cast %25 : vector<5x5x4xf32> to vector<1x5x5x4xf32>
    tpu.vector_store %arg4[%c0_33, %c0_34, %c0_35, %c0_36], %28 {strides = array<i32>} : memref<1x5x5x4xf32, #tpu.memory_space<vmem>>, vector<1x5x5x4xf32>,
    return
  }
  func.func @transform_0(%arg0: i32, %arg1: i32, %arg2: i32) -> (i32, i32, i32, i32) {
    %c0_i32 = arith.constant 0 : i32
    %c0_i32_0 = arith.constant 0 : i32
    return %arg0, %arg1, %c0_i32, %arg2 : i32, i32, i32, i32
  }
  func.func @transform_1(%arg0: i32, %arg1: i32, %arg2: i32) -> (i32, i32, i32, i32) {
    %c0_i32 = arith.constant 0 : i32
    %c0_i32_0 = arith.constant 0 : i32
    return %arg0, %arg1, %c0_i32, %arg2 : i32, i32, i32, i32
  }
}

</mosaic_0001>

<bundles_post_ra>
// kernel: maxpool2d.1
= control target key start
LH: loop header
LB: loop body
LE: loop exit
PB: predicated region body
PF: predicated region fallthrough
CT: control target
= control target key end

     0   :  { %s593_s6 = smov 0   ;;  %s595_s7 = smov 0   ;;  %s689_s0 = inlined_call_operand.vmem [shape: f32[2,16,16,4], index: 0, kind: input, shape index: {}]   ;;  %s690_s1 = inlined_call_operand.vmem [shape: f32[2,5,5,4], index: 1, kind: output, shape index: {}]  }
   0x1   :  { %s597_s8 = smov 0  }
   0x2 LB: > { %s30_s9 = sadd.s32 1, %s577_s7  ;;  %p483_p0 = scmp.ge.s32.totalorder %s581_s8, 1  ;;  %s581_s8 = sphi %s597_s8, %s11_s8   ;;  %s577_s7 = sphi %s595_s7, %s692_s7   ;;  %s573_s6 = sphi %s593_s6, %s691_s6  }
   0x3   : > { %p32_p1 = scmp.ge.s32.totalorder %s30_s9, 2  ;;  %p133_p2 = scmp.lt.s32.totalorder %s581_s8, 3 }
   0x5   : > { %s694_s9 = smov (%p32_p1, %s30_s9), 0  ;;  %p134_p3 = pnand %p483_p0, %p133_p2 }
   0x6   : > { %p179_p4 = scmp.lt.s32.totalorder (!%p134_p3), %s573_s6, 1  ;;  %vm339_vm0 = vcmask (!%p134_p3), 28672  }
   0x7   : > { %137 = sbr.rel (%p134_p3) target bundleno = 50 (0x32), region = 24 }
   0xe   : > { %s696_s6 = smov (!%p179_p4, %s573_s6), 1 }
   0xf   : > { %s533_s10 = sshll.u32 %s696_s6, 8  ;;  %s534_s14 = smul.u32 40, %s696_s6 }
  0x10   : > { %s617_s13 = scalar_lea.vmem %s689_s0, %s533_s10 }
  0x11   : > { %v210_v0 = vld [vmem:[%s617_s13] ss:$3 sm:$0x1f]  ;;  %v491_v1 = vld [vmem:[%s617_s13 + $0x1] ss:$3 sm:$0x1f]  ;;  %s645_s17 = scalar_lea.vmem %s690_s1, %s534_s14 }
  0x12   : > { %v229_v2 = vmax.f32 %v210_v0, %v491_v1  ;;  %v496_v3 = vld [vmem:[%s617_s13 + $0x2] ss:$3 sm:$0x1f]  ;;  %v501_v4 = vld [vmem:[%s617_s13 + $0x10] ss:$3 sm:$0x1f] }
  0x13   : > { %v506_v6 = vld [vmem:[%s617_s13 + $0x11] ss:$3 sm:$0x1f]  ;;  %v487_v7 = vld [vmem:[%s617_s13 + $0x30] ss:$3 sm:$0x1f] }
  0x14   : > { %v244_v5 = vmax.f32 %v229_v2, %v496_v3  ;;  %v492_v9 = vld [vmem:[%s617_s13 + $0x31] ss:$3 sm:$0x1f]  ;;  %v497_v10 = vld [vmem:[%s617_s13 + $0x32] ss:$3 sm:$0x1f] }
  0x15   : > { %v511_v11 = vld [vmem:[%s617_s13 + $0x12] ss:$3 sm:$0x1f]  ;;  %v230_v12 = vmax.f32 %v487_v7, %v492_v9  ;;  %v502_v14 = vld [vmem:[%s617_s13 + $0x40] ss:$3 sm:$0x1f] }
  0x16   : > { %v259_v8 = vmax.f32 %v244_v5, %v501_v4  ;;  %v516_v15 = vld [vmem:[%s617_s13 + $0x20] ss:$3 sm:$0x1f]  ;;  %v507_v17 = vld [vmem:[%s617_s13 + $0x41] ss:$3 sm:$0x1f] }
  0x17   : > { %v245_v16 = vmax.f32 %v230_v12, %v497_v10  ;;  %v488_v19 = vld [vmem:[%s617_s13 + $0x60] ss:$3 sm:$0x1f]  ;;  %v493_v20 = vld [vmem:[%s617_s13 + $0x61] ss:$3 sm:$0x1f] }
  0x18   : > { %v274_v13 = vmax.f32 %v259_v8, %v506_v6  ;;  %v521_v21 = vld [vmem:[%s617_s13 + $0x21] ss:$3 sm:$0x1f]  ;;  %v231_v23 = vmax.f32 %v488_v19, %v493_v20  ;;  %v498_v24 = vld [vmem:[%s617_s13 + $0x62] ss:$3 sm:$0x1f] }
  0x19   : > { %v260_v22 = vmax.f32 %v245_v16, %v502_v14  ;;  %v512_v26 = vld [vmem:[%s617_s13 + $0x42] ss:$3 sm:$0x1f]  ;;  %v503_v27 = vld [vmem:[%s617_s13 + $0x70] ss:$3 sm:$0x1f] }
  0x1a   : > { %v289_v18 = vmax.f32 %v274_v13, %v511_v11  ;;  %v526_v28 = vld [vmem:[%s617_s13 + $0x22] ss:$3 sm:$0x1f]  ;;  %v517_v30 = vld [vmem:[%s617_s13 + $0x50] ss:$3 sm:$0x1f]  ;;  %v246_v31 = vmax.f32 %v231_v23, %v498_v24 }
  0x1b   : > { %v275_v29 = vmax.f32 %v260_v22, %v507_v17  ;;  %v508_v33 = vld [vmem:[%s617_s13 + $0x71] ss:$3 sm:$0x1f]  ;;  %v489_v34 = vld [vmem:[%s617_s13 + $0x90] ss:$3 sm:$0x1f] }
  0x1c   : > { %v304_v25 = vmax.f32 %v289_v18, %v516_v15  ;;  %v261_v36 = vmax.f32 %v246_v31, %v503_v27  ;;  %v494_v37 = vld [vmem:[%s617_s13 + $0x91] ss:$3 sm:$0x1f]  ;;  %v499_v38 = vld [vmem:[%s617_s13 + $0x92] ss:$3 sm:$0x1f] }
  0x1d   : > { %v290_v35 = vmax.f32 %v275_v29, %v512_v26  ;;  %v522_v40 = vld [vmem:[%s617_s13 + $0x51] ss:$3 sm:$0x1f]  ;;  %v513_v41 = vld [vmem:[%s617_s13 + $0x72] ss:$3 sm:$0x1f]  ;;  %v232_v42 = vmax.f32 %v489_v34, %v494_v37 }
  0x1e   : > { %v319_v32 = vmax.f32 %v304_v25, %v521_v21  ;;  %v527_v44 = vld [vmem:[%s617_s13 + $0x52] ss:$3 sm:$0x1f]  ;;  %v276_v45 = vmax.f32 %v261_v36, %v508_v33  ;;  %v504_v46 = vld [vmem:[%s617_s13 + $0xa0] ss:$3 sm:$0x1f] }
  0x1f   : > { %v305_v43 = vmax.f32 %v290_v35, %v517_v30  ;;  %v518_v47 = vld [vmem:[%s617_s13 + $0x80] ss:$3 sm:$0x1f]  ;;  %v247_v48 = vmax.f32 %v232_v42, %v499_v38  ;;  %v509_v49 = vld [vmem:[%s617_s13 + $0xa1] ss:$3 sm:$0x1f] }
  0x20   : > { %v334_v39 = vmax.f32 %v319_v32, %v526_v28  ;;  %v291_v51 = vmax.f32 %v276_v45, %v513_v41  ;;  %v490_v52 = vld [vmem:[%s617_s13 + $0xc0] ss:$3 sm:$0x1f]  ;;  %v495_v53 = vld [vmem:[%s617_s13 + $0xc1] ss:$3 sm:$0x1f] }
  0x21   : > { %v320_v50 = vmax.f32 %v305_v43, %v522_v40  ;;  %v523_v54 = vld [vmem:[%s617_s13 + $0x81] ss:$3 sm:$0x1f]  ;;  %v262_v55 = vmax.f32 %v247_v48, %v504_v46  ;;  %v233_v56 = vmax.f32 %v490_v52, %v495_v53  ;;  %v500_v57 = vld [vmem:[%s617_s13 + $0xc2] ss:$3 sm:$0x1f] }
  0x22   : > { %340 = vst.msk [vmem:[%s645_s17] sm:$0x1f] %vm339_vm0, %v334_v39  ;;  %v306_v59 = vmax.f32 %v291_v51, %v518_v47  ;;  %v514_v60 = vld [vmem:[%s617_s13 + $0xa2] ss:$3 sm:$0x1f] }
  0x23   : > { %v335_v58 = vmax.f32 %v320_v50, %v527_v44  ;;  %v505_v61 = vld [vmem:[%s617_s13 + $0xd0] ss:$3 sm:$0x1f]  ;;  %v528_v62 = vld [vmem:[%s617_s13 + $0x82] ss:$3 sm:$0x1f]  ;;  %v277_v63 = vmax.f32 %v262_v55, %v509_v49  ;;  %v248_v0 = vmax.f32 %v233_v56, %v500_v57 }
  0x24   : > { %v321_v1 = vmax.f32 %v306_v59, %v523_v54  ;;  %v519_v2 = vld [vmem:[%s617_s13 + $0xb0] ss:$3 sm:$0x1f]  ;;  %v510_v3 = vld [vmem:[%s617_s13 + $0xd1] ss:$3 sm:$0x1f] }
  0x25   : > { %341 = vst.msk [vmem:[%s645_s17 + $0x8] sm:$0x1f] %vm339_vm0, %v335_v58  ;;  %v292_v4 = vmax.f32 %v277_v63, %v514_v60  ;;  %v263_v5 = vmax.f32 %v248_v0, %v505_v61  ;;  %v524_v7 = vld [vmem:[%s617_s13 + $0xb1] ss:$3 sm:$0x1f] }
  0x26   : > { %v336_v6 = vmax.f32 %v321_v1, %v528_v62  ;;  %v515_v8 = vld [vmem:[%s617_s13 + $0xd2] ss:$3 sm:$0x1f]  ;;  %v520_v12 = vld [vmem:[%s617_s13 + $0xe0] ss:$3 sm:$0x1f] }
  0x27   : > { %v307_v9 = vmax.f32 %v292_v4, %v519_v2  ;;  %v278_v10 = vmax.f32 %v263_v5, %v510_v3  ;;  %v529_v11 = vld [vmem:[%s617_s13 + $0xb2] ss:$3 sm:$0x1f]  ;;  %v525_v15 = vld [vmem:[%s617_s13 + $0xe1] ss:$3 sm:$0x1f] }
  0x28   : > { %342 = vst.msk [vmem:[%s645_s17 + $0x10] sm:$0x1f] %vm339_vm0, %v336_v6  ;;  %v530_v18 = vld [vmem:[%s617_s13 + $0xe2] ss:$3 sm:$0x1f] }
  0x29   : > { %v322_v13 = vmax.f32 %v307_v9, %v524_v7  ;;  %v293_v14 = vmax.f32 %v278_v10, %v515_v8 }
  0x2b   : > { %v337_v16 = vmax.f32 %v322_v13, %v529_v11  ;;  %v308_v17 = vmax.f32 %v293_v14, %v520_v12 }
  0x2d   : > { %343 = vst.msk [vmem:[%s645_s17 + $0x18] sm:$0x1f] %vm339_vm0, %v337_v16  ;;  %v323_v19 = vmax.f32 %v308_v17, %v525_v15 }
  0x2f   : > { %v338_v20 = vmax.f32 %v323_v19, %v530_v18 }
  0x31   : > { %344 = vst.msk [vmem:[%s645_s17 + $0x20] sm:$0x1f] %vm339_vm0, %v338_v20 }
  0x32 PF: > { %s11_s8 = sadd.s32 1, %s581_s8   ;;  %s691_s6 = smov %s577_s7 }
  0x33   : > { %p8_p5 = scmp.ge.s32.totalorder %s11_s8, 4   ;;  %s692_s7 = smov %s694_s9 }
  0x35   :  { %10 = sbr.rel (!%p8_p5) target bundleno = 2 (0x2), region = 98 }

</bundles_post_ra>
